<compile_context>
chip_gen: v6e
topology: v6e:2x2x1
jax: 0.10.0
libtpu: 0.0.40
codegen_flags: <defaults>
</compile_context>

<pallas_src>
import functools

import jax
import jax.numpy as jnp
from jax.experimental import pallas as pl
from jax.experimental.pallas import tpu as pltpu


def _shift_conv_kernel(x_ref, w_ref, o_ref, *, chan_stride):
    """x_ref/o_ref: (R, HW) with rows ordered (clip, t, channel); w_ref: (3, R, 1) taps.

    Temporal shift by one frame == row shift by C (= chan_stride). The cyclic wrap of the
    roll (and any cross-clip rows inside the block) land only on rows whose corresponding
    prev/next tap was zeroed in the wrapper, so no explicit mask is needed.
    """
    x = x_ref[...]                                   # (R, HW)
    w = w_ref[...]                                   # (3, R, 1), broadcasts over lanes
    rows = x.shape[0]
    x_prev = pltpu.roll(x, chan_stride, axis=0)          # x[t-1] for rows with t >= 1
    x_next = pltpu.roll(x, rows - chan_stride, axis=0)   # x[t+1] for rows with t <= T-2
    o_ref[...] = w[1] * x + w[0] * x_prev + w[2] * x_next   # single full-width store


def _choose_batch_tile(n_batch, rows_per_clip, clip_bytes, target_bytes):
    """Clips per grid step: divides n_batch, keeps block rows a multiple of 8, stays under
    the per-block byte target, and leaves >= 2 grid steps when possible (v7x has 2 TCs)."""
    candidates = [
        d for d in range(1, n_batch + 1)
        if n_batch % d == 0 and ((d * rows_per_clip) % 8 == 0 or d == n_batch)
    ]
    if not candidates:
        return n_batch
    best = candidates[0]
    for d in candidates:
        if d * clip_bytes > target_bytes and d != best:
            break
        if n_batch > 1 and n_batch // d < 2:
            break
        best = d
    return best


def shift_module_forward(x, weight, n_segment, *, block_target_bytes=2 << 20):
    """x: (NT, C, H, W); weight: (C, 3) depthwise temporal conv taps [prev, center, next]."""
    nt, c, h, w = x.shape
    assert nt % n_segment == 0, "NT must be divisible by n_segment"
    if weight.shape != (c, 3):
        # The module's forward is only valid when conv channels (2*fold) == C, i.e. n_div == 2.
        raise ValueError(f"weight must have shape ({c}, 3); got {weight.shape} "
                         "(ShiftModule forward requires 2*fold == input_channels)")
    n_batch = nt // n_segment
    hw = h * w
    dtype = x.dtype

    # Free, lane-dense layout: rows = (clip, t, channel), lanes = H*W.
    rows_per_clip = n_segment * c
    xr = x.reshape(nt * c, hw)

    clip_bytes = rows_per_clip * hw * dtype.itemsize
    b_tile = _choose_batch_tile(n_batch, rows_per_clip, clip_bytes, block_target_bytes)
    block_rows = b_tile * rows_per_clip
    grid = (n_batch // b_tile,)

    # Tiny per-row taps (3 * block_rows elements), lane-broadcast inside the kernel.
    # Zero the prev tap at t == 0 and the next tap at t == T-1: this implements the conv's
    # zero padding AND neutralizes the in-kernel roll's cyclic / cross-clip rows.
    taps = weight.T.astype(dtype)                               # (3, C)
    w_clip = jnp.tile(taps[:, None, :], (1, n_segment, 1))      # (3, T, C)
    w_clip = w_clip.at[0, 0, :].set(0.0)                        # no frame before t = 0
    w_clip = w_clip.at[2, n_segment - 1, :].set(0.0)            # no frame after t = T-1
    w_block = jnp.tile(w_clip.reshape(3, rows_per_clip), (1, b_tile))
    w_block = w_block.reshape(3, block_rows, 1)

    kernel = functools.partial(_shift_conv_kernel, chan_stride=c)
    out = pl.pallas_call(
        kernel,
        out_shape=jax.ShapeDtypeStruct(xr.shape, dtype),
        grid_spec=pltpu.PrefetchScalarGridSpec(
            num_scalar_prefetch=0,
            grid=grid,
            in_specs=[
                pl.BlockSpec((block_rows, hw), lambda i: (i, 0)),
                # Same (tiny) weight block for every grid step -> fetched once.
                pl.BlockSpec((3, block_rows, 1), lambda i: (0, 0, 0)),
            ],
            out_specs=pl.BlockSpec((block_rows, hw), lambda i: (i, 0)),
        ),
        compiler_params=pltpu.CompilerParams(dimension_semantics=("parallel",)),
    )(xr, w_block)

    return out.reshape(nt, c, h, w)


def make_shift_weight(input_channels, n_div=2, mode="shift"):
    """Conv weight init matching ShiftModule.__init__ (squeezed to (C, 3)); bias=False."""
    fold = input_channels // n_div
    cw = 2 * fold  # conv channel count; forward requires cw == input_channels (n_div == 2)
    w = jnp.zeros((cw, 3), dtype=jnp.float32)
    if mode == "shift":
        w = w.at[:fold, 2].set(1.0)           # first fold channels: take x[t+1]
        w = w.at[fold:2 * fold, 0].set(1.0)   # next fold channels: take x[t-1]
    elif mode == "fixed":
        w = w.at[:, 1].set(1.0)
    # mode == 'norm': weights keep their (here zero-)initialized values.
    return w


def reference_forward(x, weight, n_segment):
    """Pure-JAX reference of the PyTorch forward (depthwise temporal conv, pad=1, no bias)."""
    nt, c, h, w = x.shape
    n = nt // n_segment
    xr = x.reshape(n, n_segment, c, h, w)
    prev = jnp.pad(xr, ((0, 0), (1, 0), (0, 0), (0, 0), (0, 0)))[:, :n_segment]
    nxt = jnp.pad(xr, ((0, 0), (0, 1), (0, 0), (0, 0), (0, 0)))[:, 1:]
    w0 = weight[:, 0][None, None, :, None, None]
    w1 = weight[:, 1][None, None, :, None, None]
    w2 = weight[:, 2][None, None, :, None, None]
    y = w0 * prev + w1 * xr + w2 * nxt
    return y.reshape(nt, c, h, w)


if __name__ == "__main__":
    # Small shapes consistent with the module: n_batch=2, n_segment=8 -> NT=16, C=4, H=W=16.
    input_channels = 4
    n_segment = 8
    n_div = 2  # required so conv channels (2*fold) == input_channels
    n_batch = 2
    H = W = 16

    key = jax.random.PRNGKey(0)
    x = jax.random.normal(key, (n_batch * n_segment, input_channels, H, W), dtype=jnp.float32)

    # 'shift'-mode weights (the module's default init).
    weight = make_shift_weight(input_channels, n_div=n_div, mode="shift")
    y = jax.block_until_ready(shift_module_forward(x, weight, n_segment))
    assert y.shape == x.shape
    assert jnp.allclose(y, reference_forward(x, weight, n_segment), atol=1e-5, rtol=1e-5), \
        "mismatch vs reference (shift mode)"

    # Random taps (exercises all three taps, like 'norm' mode with trained weights).
    w_rand = jax.random.normal(jax.random.PRNGKey(1), (input_channels, 3), dtype=jnp.float32)
    y2 = jax.block_until_ready(shift_module_forward(x, w_rand, n_segment))
    assert jnp.allclose(y2, reference_forward(x, w_rand, n_segment), atol=1e-5, rtol=1e-5), \
        "mismatch vs reference (random taps)"

    print("KERNEL_OK")
</pallas_src>

<mosaic_0001>
module attributes {stable_mosaic.version = 11 : i64} {
  func.func @_shift_conv_kernel(%arg0: i32, %arg1: memref<32x256xf32, #tpu.memory_space<vmem>>, %arg2: memref<3x32x1xf32, #tpu.memory_space<vmem>>, %arg3: memref<32x256xf32, #tpu.memory_space<vmem>>) attributes {dimension_semantics = [#tpu.dimension_semantics<parallel>], iteration_bounds = array<i64: 2>, scalar_prefetch = 0 : i64, scratch_operands = 0 : i64, tpu.core_type = #tpu.core_type<tc>, window_params = [{transform_indices = @transform_0, window_bounds = array<i64: 32, 256>}, {pipeline_mode = #tpu.pipeline_mode<synchronous>, transform_indices = @transform_1, window_bounds = array<i64: 3, 32, 1>}, {transform_indices = @transform_2, window_bounds = array<i64: 32, 256>}]} {
    %c0 = arith.constant 0 : index
    %c0_0 = arith.constant 0 : index
    %0 = vector.load %arg1[%c0, %c0_0] : memref<32x256xf32, #tpu.memory_space<vmem>>, vector<32x256xf32>
    %c0_1 = arith.constant 0 : index
    %c0_2 = arith.constant 0 : index
    %c0_3 = arith.constant 0 : index
    %1 = vector.load %arg2[%c0_1, %c0_2, %c0_3] : memref<3x32x1xf32, #tpu.memory_space<vmem>>, vector<3x32x1xf32>
    %c4_i32 = arith.constant 4 : i32
    %2 = tpu.dynamic_rotate %0 by %c4_i32 dim 0 : vector<32x256xf32>, i32 -> vector<32x256xf32>
    %c28_i32 = arith.constant 28 : i32
    %3 = tpu.dynamic_rotate %0 by %c28_i32 dim 0 : vector<32x256xf32>, i32 -> vector<32x256xf32>
    %4 = vector.extract_strided_slice %1 {offsets = [1, 0, 0], sizes = [1, 32, 1], strides = [1, 1, 1]} : vector<3x32x1xf32> to vector<1x32x1xf32>
    %5 = vector.shape_cast %4 : vector<1x32x1xf32> to vector<32x1xf32>
    %6 = vector.broadcast %5 : vector<32x1xf32> to vector<32x256xf32>
    %7 = arith.mulf %6, %0 : vector<32x256xf32>
    %8 = vector.extract_strided_slice %1 {offsets = [0, 0, 0], sizes = [1, 32, 1], strides = [1, 1, 1]} : vector<3x32x1xf32> to vector<1x32x1xf32>
    %9 = vector.shape_cast %8 : vector<1x32x1xf32> to vector<32x1xf32>
    %10 = vector.broadcast %9 : vector<32x1xf32> to vector<32x256xf32>
    %11 = arith.mulf %10, %2 : vector<32x256xf32>
    %12 = arith.addf %7, %11 : vector<32x256xf32>
    %13 = vector.extract_strided_slice %1 {offsets = [2, 0, 0], sizes = [1, 32, 1], strides = [1, 1, 1]} : vector<3x32x1xf32> to vector<1x32x1xf32>
    %14 = vector.shape_cast %13 : vector<1x32x1xf32> to vector<32x1xf32>
    %15 = vector.broadcast %14 : vector<32x1xf32> to vector<32x256xf32>
    %16 = arith.mulf %15, %3 : vector<32x256xf32>
    %17 = arith.addf %12, %16 : vector<32x256xf32>
    %c0_4 = arith.constant 0 : index
    %c0_5 = arith.constant 0 : index
    %18 = vector.load %arg3[%c0_4, %c0_5] : memref<32x256xf32, #tpu.memory_space<vmem>>, vector<32x256xf32>
    tpu.vector_store %arg3[%c0_4, %c0_5], %17 {strides = array<i32>} : memref<32x256xf32, #tpu.memory_space<vmem>>, vector<32x256xf32>,
    return
  }
  func.func @transform_0(%arg0: i32) -> (i32, i32) {
    %c0_i32 = arith.constant 0 : i32
    %c0_i32_0 = arith.constant 0 : i32
    return %arg0, %c0_i32 : i32, i32
  }
  func.func @transform_1(%arg0: i32) -> (i32, i32, i32) {
    %c0_i32 = arith.constant 0 : i32
    %c0_i32_0 = arith.constant 0 : i32
    %c0_i32_1 = arith.constant 0 : i32
    %c0_i32_2 = arith.constant 0 : i32
    return %c0_i32, %c0_i32_0, %c0_i32_1 : i32, i32, i32
  }
  func.func @transform_2(%arg0: i32) -> (i32, i32) {
    %c0_i32 = arith.constant 0 : i32
    %c0_i32_0 = arith.constant 0 : i32
    return %arg0, %c0_i32 : i32, i32
  }
}

</mosaic_0001>

<bundles_post_ra>
// kernel: tpu_custom_call.1
= control target key start
LH: loop header
LB: loop body
LE: loop exit
PB: predicated region body
PF: predicated region fallthrough
CT: control target
= control target key end

     0   :  { %7 = vsyncpa [#allocation3], 0  ;;  %s801_s0 = inlined_call_operand.hbm [shape: f32[64,256], index: 0, kind: input, shape index: {}]   ;;  %s802_s1 = inlined_call_operand.vmem [shape: f32[3,32,1], index: 1, kind: input, shape index: {}]   ;;  %s803_s2 = inlined_call_operand.hbm [shape: f32[64,256], index: 2, kind: output, shape index: {}]  }
   0x1   :  { %9 = vsyncpa [#allocation3 + $0x1], 0 }
   0x2   :  { %10 = vsyncpa [#allocation4], 0 }
   0x3   :  { %12 = vsyncpa [#allocation4 + $0x1], 0  ;;  %s589_s9 = smov 0   ;;  %s591_s10 = smov 0  }
   0x4   :  { %s593_s11 = smov 0   ;;  %s595_s12 = smov 0  }
   0x5 LB: > { %s610_s13 = sadd.s32 4294967295, %s565_s12   ;;  %s400_s14 = sadd.s32 4294967294, %s565_s12   ;;  %s565_s12 = sphi %s595_s12, %s818_s12   ;;  %s561_s11 = sphi %s593_s11, %s817_s11   ;;  %s557_s10 = sphi %s591_s10, %s816_s10   ;;  %s553_s9 = sphi %s589_s9, %s815_s9  }
   0x6   : > { %s614_s15 = sadd.s32 1, %s565_s12   ;;  %s25_s16 = sadd.s32 1, %s561_s11 }
   0x7   : > { %s22_s17 = ssub.s32 %s565_s12, %s614_s15  ;;  %p32_p0 = scmp.ne.s32.totalorder %s561_s11, %s557_s10 }
   0x8   : > { %p23_p1 = scmp.eq.s32.totalorder %s22_s17, 0  ;;  %p33_p2 = scmp.eq.s32.totalorder %s565_s12, 0 }
   0x9   : > { %p38_p3 = scmp.ne.s32.totalorder %s557_s10, %s553_s9  ;;  %p39_p4 = scmp.eq.s32.totalorder %s610_s13, 0 }
   0xa   : > { %s626_s18 = scalar_select %p23_p1, %s561_s11, %s25_s16  }
   0xb   : > { %p628_p5 = por %p33_p2, %p32_p0  ;;  %p632_p6 = por %p39_p4, %p38_p3 }
   0xc   : > { %p83_p7 = scmp.eq.s32.totalorder %s610_s13, 1  ;;  %p89_p8 = scmp.eq.s32.totalorder %s400_s14, 1 }
   0xd   : > { %s807_s20 = scalar_select %p632_p6, 1, 0 }
   0xe   : > { %p432_p10 = scmp.lt.s32.totalorder %s565_s12, 2  ;;  %p639_p11 = por %p83_p7, %p32_p0 }
   0xf   : > { %p643_p12 = por %p89_p8, %p38_p3  ;;  %s112_s23 = sand.u32 1, %s561_s11  }
  0x10   : > { %s808_s21 = scalar_select %p639_p11, 1, 0 }
  0x11   : > { %s809_s22 = scalar_select %p643_p12, 1, 0 }
  0x12   : > { %s417_s24 = sshll.u32 %s565_s12, 10  ;;  %s403_s25 = sshll.u32 %s112_s23, 6 }
  0x13   : > { %s652_s28 = scalar_lea.hbm %s801_s0, %s417_s24  ;;  %s116_s29 = scalar_lea.vmem [#allocation2], %s403_s25 }
  0x14   : > { %s124_s30 = sshll.u32 %s116_s29, 4  ;;  %p656_p13 = pnand %p432_p10, %p628_p5  ;;  %s660_s30 = int_to_ptr.vmem [resolvable:$true] %s124_s30 }
  0x15   : > { %s662_s4 = scalar_lea.sflag [#allocation3], %s112_s23  ;;  %s473_s5 = scalar_lea.hbm %s652_s28, 1024 }
  0x16   : > { %p474_p0 = scmp.ne.s32.totalorder %s652_s28, %s473_s5  ;;  %p475_p1 = pneg %p656_p13 }
  0x17   : > { %s478_s8 = scalar_lea.hbm %s801_s0, 2048  ;;  %p479_p4 = scmp.lt.s32.totalorder %s652_s28, %s801_s0 }
  0x18   : > { %p476_p2 = pnand %p475_p1, %p474_p0  ;;  %p480_p5 = scmp.lt.s32.totalorder %s478_s8, %s473_s5 }
  0x1a   : > { %p477_p3 = pneg %p476_p2  ;;  %p481_p7 = por %p480_p5, %p479_p4 }
  0x1c   : > { %p482_p8 = pnand %p481_p7, %p477_p3 }
  0x1e   : > { %485 = shalt.err (!%p482_p8)
}
  0x1f   : > { %s486_s17 = scalar_lea.vmem %s660_s30, 1024  ;;  %s567_s19 = smov [#allocation2]  }
  0x20   : > { %p487_p10 = scmp.ne.s32.totalorder %s660_s30, %s486_s17  ;;  %s491_s23 = sshll.u32 %s567_s19, 4  ;;  %s492_s23 = int_to_ptr.vmem [resolvable:$false] %s491_s23 }
  0x21   : > { %s493_s24 = scalar_lea.vmem %s492_s23, 2048  ;;  %p494_p2 = scmp.lt.s32.totalorder %s660_s30, %s492_s23 }
  0x22   : > { %p489_p9 = pnand %p487_p10, %p475_p1  ;;  %p495_p12 = scmp.lt.s32.totalorder %s493_s24, %s486_s17 }
  0x24   : > { %p490_p0 = pneg %p489_p9  ;;  %p496_p11 = por %p495_p12, %p494_p2 }
  0x26   : > { %p497_p6 = pnand %p496_p11, %p490_p0 }
  0x28   : > { %500 = shalt.err (!%p497_p6)
}
  0x29   : > { %s568_s25 = smov 256   ;;  %s569_s26 = smov 16  }
  0x2a   : > { %427 = dma.hbm_to_vmem [thread:$0]  (!%p656_p13), %s652_s28, 1024, %s660_s30, %s662_s4, %s568_s25, %s568_s25, %s569_s26  }
  0x2b   : > { %p407_p9 = scmp.ge.s32.totalorder %s565_s12, 1  ;;  %p132_p1 = scmp.lt.s32.totalorder %s565_s12, 3 }
  0x2d   : > { %p133_p3 = pnand %p407_p9, %p132_p1 }
  0x2e   : > { %s686_s27 = sand.u32 (!%p133_p3), 1, %s557_s10   ;;  %p811_p6 = scmp.ne.s32.totalorder (!%p133_p3), %s807_s20, 0 }
  0x2f   : > { %136 = sbr.rel (%p133_p3) target bundleno = 218 (0xda), region = 28  ;;  %s408_s29 = sshll.u32 (!%p133_p3), %s686_s27, 6 }
  0x30   : > { %s139_s5 = scalar_lea.sflag (!%p133_p3), [#allocation3], %s686_s27  ;;  %s692_s6 = scalar_lea.vmem (!%p133_p3), [#allocation2], %s408_s29 }
  0x34   : > { %544 = dma.done.wait (%p811_p6), %s139_s5, 1024  }
  0x35   : > { %546 = vsyncadd (%p811_p6), %s139_s5, 4294966272  ;;  %v570_v0 = vmov 0   ;;  %v179_v1 = vld [vmem:[%s802_s1 + $0x30] sm:$0xff]  ;;  %v177_v2 = vld [vmem:[%s802_s1 + $0x20] sm:$0xff]  ;;  %v193_v13 = vlaneseq  ;;  %s162_s16 = scalar_lea.vmem [#allocation5], %s408_s29  ;;  %s313_s23 = scalar_lea.sflag [#allocation4], %s686_s27 }
  0x36   : > { %472 = vset.pattern.permute.xlu1 %v570_v0  ;;  %471 = vset.pattern.permute.xlu0 %v570_v0  ;;  %v180_v3 = vld [vmem:[%s802_s1 + $0x38] sm:$0xff]  ;;  %v178_v4 = vld [vmem:[%s802_s1 + $0x28] sm:$0xff]  ;;  %v173_v6 = vld [vmem:[%s802_s1] sm:$0xff]  ;;  %s327_s17 = sshll.u32 %s162_s16, 4  ;;  %p812_p12 = scmp.ne.s32.totalorder %s808_s21, 0  ;;  %s758_s17 = int_to_ptr.vmem [resolvable:$true] %s327_s17 }
  0x37   : > { %216 = vperm.xlu1 %472, %v179_v1   ;;  %206 = vperm.xlu0 %471, %v177_v2   ;;  %v174_v5 = vld [vmem:[%s802_s1 + $0x8] sm:$0xff]  ;;  %v176_v7 = vld [vmem:[%s802_s1 + $0x18] sm:$0xff]  ;;  %v175_v8 = vld [vmem:[%s802_s1 + $0x10] sm:$0xff]  ;;  %v194_v20 = vshrl.u32 %v193_v13, 7  ;;  %s501_s24 = scalar_lea.vmem %s758_s17, 1024  ;;  %s571_s25 = smov [#allocation5]  }
  0x38   : > { %v182_v9 = vld [vmem:[%s802_s1 + $0x48] sm:$0xff]  ;;  %v181_v10 = vld [vmem:[%s802_s1 + $0x40] sm:$0xff]  ;;  %v184_v11 = vld [vmem:[%s802_s1 + $0x58] sm:$0xff]  ;;  %p502_p11 = scmp.ne.s32.totalorder %s758_s17, %s501_s24  ;;  %s505_s26 = sshll.u32 %s571_s25, 4  ;;  %s506_s26 = int_to_ptr.vmem [resolvable:$false] %s505_s26 }
  0x39   : > { %v183_v12 = vld [vmem:[%s802_s1 + $0x50] sm:$0xff]  ;;  %v172_v17 = vld [vmem:[%s692_s6 + $0x38] sm:$0xff]  ;;  %v165_v21 = vld [vmem:[%s692_s6] sm:$0xff]  ;;  %vm195_vm0 = vcmp.lt.s32.totalorder %v194_v20, 4  ;;  %s507_s5 = scalar_lea.vmem %s506_s26, 2048  ;;  %p508_p5 = scmp.lt.s32.totalorder %s758_s17, %s506_s26 }
  0x3a   : > { %v171_v16 = vld [vmem:[%s692_s6 + $0x30] sm:$0xff]  ;;  %v168_v19 = vld [vmem:[%s692_s6 + $0x18] sm:$0xff]  ;;  %v166_v22 = vld [vmem:[%s692_s6 + $0x8] sm:$0xff]  ;;  %v185_v23 = vrot.slane %v165_v21, 4  ;;  %v192_v27 = vrot.slane %v172_v17, 4  ;;  %p503_p13 = pnand %p502_p11, %p812_p12  ;;  %p509_p7 = scmp.lt.s32.totalorder %s507_s5, %s501_s24 }
  0x3b   : > { %221 = vperm.xlu1 %472, %v180_v3   ;;  %211 = vperm.xlu0 %471, %v178_v4   ;;  %v167_v18 = vld [vmem:[%s692_s6 + $0x10] sm:$0xff]  ;;  %v186_v24 = vrot.slane %v166_v22, 4  ;;  %v191_v26 = vrot.slane %v171_v16, 4  ;;  %v188_v30 = vrot.slane %v168_v19, 4  ;;  %v169_v31 = vld [vmem:[%s692_s6 + $0x20] sm:$0xff]  ;;  %v170_v32 = vld [vmem:[%s692_s6 + $0x28] sm:$0xff] }
  0x3c   : > { %v187_v29 = vrot.slane %v167_v18, 4  ;;  %v189_v33 = vrot.slane %v169_v31, 4  ;;  %v190_v34 = vrot.slane %v170_v32, 4  ;;  %s419_s6 = sshll.u32 %s610_s13, 10  ;;  %p504_p4 = pneg %p503_p13 }
  0x3d   : > { %v201_v37 = vsel %vm195_vm0, %v186_v24, %v188_v30  ;;  %v202_v39 = vsel %vm195_vm0, %v191_v26, %v185_v23  ;;  %v203_v40 = vsel %vm195_vm0, %v192_v27, %v186_v24  ;;  %s756_s29 = scalar_lea.hbm %s803_s2, %s419_s6  ;;  %p510_p8 = por %p509_p7, %p508_p5 }
  0x3e   : > { %v200_v36 = vsel %vm195_vm0, %v185_v23, %v187_v29  ;;  %v198_v47 = vsel %vm195_vm0, %v187_v29, %v189_v33  ;;  %v199_v48 = vsel %vm195_vm0, %v188_v30, %v190_v34  ;;  %v196_v49 = vsel %vm195_vm0, %v189_v33, %v191_v26 }
  0x3f   : > { %239 = vperm.xlu1 %472, %v174_v5   ;;  %234 = vperm.xlu0 %471, %v173_v6   ;;  %v197_v50 = vsel %vm195_vm0, %v190_v34, %v192_v27  ;;  %p511_p10 = pnand %p510_p8, %p504_p4 }
  0x43   : > { %249 = vperm.xlu1 %472, %v176_v7   ;;  %244 = vperm.xlu0 %471, %v175_v8  }
  0x47   : > { %275 = vperm.xlu1 %472, %v182_v9   ;;  %270 = vperm.xlu0 %471, %v181_v10  }
  0x4b   : > { %285 = vperm.xlu1 %472, %v184_v11   ;;  %280 = vperm.xlu0 %471, %v183_v12  }
  0xb2   : > { %v217_v14 = vpop.permute.xlu1 %216  ;;  %v207_v15 = vpop.permute.xlu0 %206 }
  0xb3   : > { %v224_v51 = vmul.f32 %v207_v15, %v165_v21  ;;  %v225_v52 = vmul.f32 %v207_v15, %v166_v22  ;;  %v228_v5 = vmul.f32 %v217_v14, %v169_v31  ;;  %v229_v6 = vmul.f32 %v217_v14, %v170_v32 }
  0xb6   : > { %v222_v25 = vpop.permute.xlu1 %221  ;;  %v212_v28 = vpop.permute.xlu0 %211 }
  0xb7   : > { %v226_v53 = vmul.f32 %v212_v28, %v167_v18  ;;  %v227_v54 = vmul.f32 %v212_v28, %v168_v19  ;;  %v230_v7 = vmul.f32 %v222_v25, %v171_v16  ;;  %v231_v8 = vmul.f32 %v222_v25, %v172_v17 }
  0xba   : > { %v240_v35 = vpop.permute.xlu1 %239  ;;  %v235_v38 = vpop.permute.xlu0 %234 }
  0xbb   : > { %v254_v41 = vmul.f32 %v240_v35, %v200_v36  ;;  %v255_v42 = vmul.f32 %v240_v35, %v201_v37  ;;  %v252_v43 = vmul.f32 %v235_v38, %v202_v39  ;;  %v253_v44 = vmul.f32 %v235_v38, %v203_v40 }
  0xbd   : > { %v262_v55 = vadd.f32 %v254_v41, %v226_v53  ;;  %v263_v56 = vadd.f32 %v255_v42, %v227_v54  ;;  %v260_v57 = vadd.f32 %v252_v43, %v224_v51  ;;  %v261_v58 = vadd.f32 %v253_v44, %v225_v52 }
  0xbe   : > { %v250_v45 = vpop.permute.xlu1 %249  ;;  %v245_v46 = vpop.permute.xlu0 %244 }
  0xbf   : > { %v256_v59 = vmul.f32 %v245_v46, %v198_v47  ;;  %v257_v60 = vmul.f32 %v245_v46, %v199_v48  ;;  %v258_v63 = vmul.f32 %v250_v45, %v196_v49  ;;  %v259_v0 = vmul.f32 %v250_v45, %v197_v50 }
  0xc1   : > { %v264_v13 = vadd.f32 %v256_v59, %v228_v5  ;;  %v265_v15 = vadd.f32 %v257_v60, %v229_v6  ;;  %v266_v20 = vadd.f32 %v258_v63, %v230_v7  ;;  %v267_v21 = vadd.f32 %v259_v0, %v231_v8 }
  0xc2   : > { %v276_v61 = vpop.permute.xlu1 %275  ;;  %v271_v62 = vpop.permute.xlu0 %270 }
  0xc3   : > { %v290_v1 = vmul.f32 %v276_v61, %v198_v47  ;;  %v291_v2 = vmul.f32 %v276_v61, %v199_v48  ;;  %v288_v3 = vmul.f32 %v271_v62, %v200_v36  ;;  %v289_v4 = vmul.f32 %v271_v62, %v201_v37 }
  0xc5   : > { %v298_v9 = vadd.f32 %v290_v1, %v262_v55  ;;  %v299_v10 = vadd.f32 %v291_v2, %v263_v56  ;;  %v296_v11 = vadd.f32 %v288_v3, %v260_v57  ;;  %v297_v12 = vadd.f32 %v289_v4, %v261_v58 }
  0xc6   : > { %v286_v18 = vpop.permute.xlu1 %285  ;;  %v281_v19 = vpop.permute.xlu0 %280 }
  0xc7   : > { %306 = vst [vmem:[%s162_s16 + $0x10] sm:$0xff] %v298_v9  ;;  %307 = vst [vmem:[%s162_s16 + $0x18] sm:$0xff] %v299_v10  ;;  %v294_v22 = vmul.f32 %v286_v18, %v202_v39  ;;  %v295_v14 = vmul.f32 %v286_v18, %v203_v40  ;;  %v292_v16 = vmul.f32 %v281_v19, %v196_v49 }
  0xc8   : > { %304 = vst [vmem:[%s162_s16] sm:$0xff] %v296_v11  ;;  %305 = vst [vmem:[%s162_s16 + $0x8] sm:$0xff] %v297_v12  ;;  %v293_v17 = vmul.f32 %v281_v19, %v197_v50 }
  0xc9   : > { %v300_v23 = vadd.f32 %v292_v16, %v264_v13  ;;  %v302_v25 = vadd.f32 %v294_v22, %v266_v20  ;;  %v303_v26 = vadd.f32 %v295_v14, %v267_v21 }
  0xca   : > { %v301_v24 = vadd.f32 %v293_v17, %v265_v15 }
  0xcb   : > { %308 = vst [vmem:[%s162_s16 + $0x20] sm:$0xff] %v300_v23  ;;  %310 = vst [vmem:[%s162_s16 + $0x30] sm:$0xff] %v302_v25 }
  0xcc   : > { %309 = vst [vmem:[%s162_s16 + $0x28] sm:$0xff] %v301_v24  ;;  %311 = vst [vmem:[%s162_s16 + $0x38] sm:$0xff] %v303_v26 }
  0xcd   : > { %514 = shalt.err (!%p511_p10)
}
  0xce   : > { %s515_s28 = scalar_lea.hbm %s756_s29, 1024  ;;  %s519_s4 = scalar_lea.hbm %s803_s2, 2048 }
  0xcf   : > { %p516_p0 = scmp.ne.s32.totalorder %s756_s29, %s515_s28  ;;  %p520_p1 = scmp.lt.s32.totalorder %s756_s29, %s803_s2 }
  0xd0   : > { %p521_p3 = scmp.lt.s32.totalorder %s519_s4, %s515_s28 }
  0xd1   : > { %p517_p2 = pnand %p516_p0, %p812_p12 }
  0xd2   : > { %p522_p6 = por %p521_p3, %p520_p1 }
  0xd3   : > { %p518_p9 = pneg %p517_p2 }
  0xd5   : > { %p523_p11 = pnand %p522_p6, %p518_p9 }
  0xd7   : > { %526 = shalt.err (!%p523_p11)
}
  0xd8   : > { %s572_s14 = smov 256   ;;  %s573_s20 = smov 16  }
  0xd9   : > { %422 = dma.vmem_to_hbm [thread:$0]  (%p812_p12), %s758_s17, 1024, %s756_s29, %s313_s23, %s572_s14, %s572_s14, %s573_s20  }
  0xda PF: > { %s342_s6 = sand.u32 1, %s553_s9   ;;  %p813_p13 = scmp.ne.s32.totalorder %s809_s22, 0 }
  0xdb   : > { %p814_p4 = scmp.ge.s32.totalorder %s565_s12, 2  ;;  %s343_s16 = scalar_lea.sflag [#allocation4], %s342_s6 }
  0xdd   : > { %p429_p5 = pnand %p814_p4, %p813_p13 }
  0xdf   : > { %p430_p7 = pneg %p429_p5 }
  0xe1   : > { %548 = dma.done.wait (%p430_p7), %s343_s16, 1024  }
  0xe2   : > { %550 = vsyncadd (%p430_p7), %s343_s16, 4294966272  ;;  %p15_p8 = scmp.ge.s32.totalorder %s614_s15, 4   ;;  %s815_s9 = smov %s557_s10 }
  0xe3   : > { %s816_s10 = smov %s561_s11  ;;  %s817_s11 = smov %s626_s18 }
  0xe4   : > { %s818_s12 = smov %s614_s15  ;;  %17 = sbr.rel (!%p15_p8) target bundleno = 5 (0x5), region = 73 }
  0xe9   :  { %348 = vsyncpa [#allocation3], 1 }
  0xea   :  { %350 = vsyncpa [#allocation3 + $0x1], 1 }
  0xeb   :  { %351 = vsyncpa [#allocation4], 1 }
  0xec   :  { %353 = vsyncpa [#allocation4 + $0x1], 1 }

</bundles_post_ra>
